<compile_context>
chip_gen: v7x
topology: tpu7x:2x2x1
jax: 0.10.0
libtpu: 0.0.40
codegen_flags: <defaults>
</compile_context>

<pallas_src>
import jax
import jax.numpy as jnp
from jax.experimental import pallas as pl
from jax.experimental.pallas import tpu as pltpu


def _round_up(x: int, m: int) -> int:
    return ((x + m - 1) // m) * m


# ---------------------------------------------------------------------------
# Stage 1: per-source-node messages  msg = relu(X @ W1 + b1)   (stored bf16)
# ---------------------------------------------------------------------------
def message_kernel(x_ref, w1_ref, b1_ref, msg_ref):
    m = jnp.dot(x_ref[...], w1_ref[...], preferred_element_type=jnp.float32)
    m = jnp.maximum(m + b1_ref[...], 0.0)
    msg_ref[...] = m.astype(msg_ref.dtype)


# ---------------------------------------------------------------------------
# Stage 2: aggregation + final transform  out = (A @ msg) @ W2 + b2
# Grid = (dst_tiles, src_tiles); src axis is the reduction (last, "arbitrary").
# ---------------------------------------------------------------------------
def aggregate_kernel(adj_ref, msg_ref, w2_ref, b2_ref, out_ref, acc_ref):
    @pl.when(pl.program_id(1) == 0)
    def _():
        acc_ref[...] = jnp.zeros_like(acc_ref)

    # Dominant matmul: bf16 operands, f32 accumulation on the MXU.
    acc_ref[...] += jnp.dot(
        adj_ref[...], msg_ref[...], preferred_element_type=jnp.float32
    )

    @pl.when(pl.program_id(1) == pl.num_programs(1) - 1)
    def _():
        out = (
            jnp.dot(acc_ref[...], w2_ref[...], preferred_element_type=jnp.float32)
            + b2_ref[...]
        )
        out_ref[...] = out.astype(out_ref.dtype)


def mp_layer(adj, x, w1, b1, w2, b2):
    """adj: (N, N) float (A[dst, src] = edge count); x: (N, in_feats);
    w1: (in, out); b1: (1, out); w2: (out, out); b2: (1, out)  ->  (N, out)."""
    n, in_feats = x.shape
    out_feats = w1.shape[1]

    # Lane-dense feature dims; node dim padded to the tile size.
    in_p = _round_up(in_feats, 128)
    out_p = _round_up(out_feats, 128)
    # One tile constant keeps N's padding simple.  512 keeps the adj tile at
    # 512x512 bf16 = 512 KiB (x2 buffers) -- comfortably inside the 32 MiB
    # scoped-VMEM default on every generation (v5e/v6e could go larger,
    # v7x should not exceed its 64 MiB physical budget).
    tile = min(512, _round_up(max(n, 1), 128))
    tm = tk = tile
    n_p = _round_up(max(n, 1), tile)

    f32 = jnp.float32
    bf16 = jnp.bfloat16

    # Zero-pad everything (zeros are inert for relu/matmul/sum; padded rows /
    # cols are sliced off at the end).
    adj_p = jnp.zeros((n_p, n_p), bf16).at[:n, :n].set(adj.astype(bf16))
    x_p = jnp.zeros((n_p, in_p), f32).at[:n, :in_feats].set(x.astype(f32))
    w1_p = jnp.zeros((in_p, out_p), f32).at[:in_feats, :out_feats].set(w1.astype(f32))
    b1_p = jnp.zeros((1, out_p), f32).at[:, :out_feats].set(b1.astype(f32))
    w2_p = jnp.zeros((out_p, out_p), f32).at[:out_feats, :out_feats].set(w2.astype(f32))
    b2_p = jnp.zeros((1, out_p), f32).at[:, :out_feats].set(b2.astype(f32))

    # --- Stage 1: messages (computed once per source tile) -----------------
    msg = pl.pallas_call(
        message_kernel,
        out_shape=jax.ShapeDtypeStruct((n_p, out_p), bf16),
        grid_spec=pltpu.PrefetchScalarGridSpec(
            num_scalar_prefetch=0,
            grid=(n_p // tm,),
            in_specs=[
                pl.BlockSpec((tm, in_p), lambda i: (i, 0)),
                pl.BlockSpec((in_p, out_p), lambda i: (0, 0)),
                pl.BlockSpec((1, out_p), lambda i: (0, 0)),
            ],
            out_specs=pl.BlockSpec((tm, out_p), lambda i: (i, 0)),
        ),
        compiler_params=pltpu.CompilerParams(dimension_semantics=("parallel",)),
    )(x_p, w1_p, b1_p)

    # --- Stage 2: tiled aggregation + f2 ------------------------------------
    out_full = pl.pallas_call(
        aggregate_kernel,
        out_shape=jax.ShapeDtypeStruct((n_p, out_p), f32),
        grid_spec=pltpu.PrefetchScalarGridSpec(
            num_scalar_prefetch=0,
            grid=(n_p // tm, n_p // tk),
            in_specs=[
                pl.BlockSpec((tm, tk), lambda i, k: (i, k)),       # adj tile
                pl.BlockSpec((tk, out_p), lambda i, k: (k, 0)),    # msg tile
                pl.BlockSpec((out_p, out_p), lambda i, k: (0, 0)),  # W2 (full)
                pl.BlockSpec((1, out_p), lambda i, k: (0, 0)),      # b2 (full)
            ],
            out_specs=pl.BlockSpec((tm, out_p), lambda i, k: (i, 0)),
            scratch_shapes=[pltpu.VMEM((tm, out_p), jnp.float32)],
        ),
        compiler_params=pltpu.CompilerParams(
            dimension_semantics=("parallel", "arbitrary")
        ),
    )(adj_p, msg, w2_p, b2_p)

    return out_full[:n, :out_feats]


def reference(adj, x, w1, b1, w2, b2):
    msg = jnp.maximum(x @ w1 + b1, 0.0)
    agg = adj @ msg
    return agg @ w2 + b2


if __name__ == "__main__":
    # Small shapes consistent with the module: N nodes, in_feats -> out_feats.
    num_nodes, in_feats, out_feats = 16, 32, 32

    key = jax.random.PRNGKey(0)
    k_x, k_adj, k_w1, k_b1, k_w2, k_b2 = jax.random.split(key, 6)

    # Node features (number_atoms_batched_graph, in_feats)
    x = jax.random.normal(k_x, (num_nodes, in_feats), dtype=jnp.float32)

    # Deterministic sparse-ish adjacency; A[dst, src] = 1.0 if edge src->dst.
    adj = (jax.random.uniform(k_adj, (num_nodes, num_nodes)) < 0.3).astype(jnp.float32)

    # nn.Linear-style uniform init, stored pre-transposed as (in, out).
    bound1 = 1.0 / jnp.sqrt(in_feats)
    w1 = jax.random.uniform(k_w1, (in_feats, out_feats), minval=-bound1, maxval=bound1)
    b1 = jax.random.uniform(k_b1, (1, out_feats), minval=-bound1, maxval=bound1)
    bound2 = 1.0 / jnp.sqrt(out_feats)
    w2 = jax.random.uniform(k_w2, (out_feats, out_feats), minval=-bound2, maxval=bound2)
    b2 = jax.random.uniform(k_b2, (1, out_feats), minval=-bound2, maxval=bound2)

    out = mp_layer(adj, x, w1, b1, w2, b2)
    out = jax.block_until_ready(out)

    ref = reference(adj, x, w1, b1, w2, b2)
    assert out.shape == (num_nodes, out_feats)
    # Tolerance accounts for the bf16 operands fed to the A @ msg MXU matmul
    # (accumulation and the f2 epilogue stay in f32).
    assert jnp.allclose(out, ref, atol=5e-2, rtol=5e-2)

    print("KERNEL_OK")
</pallas_src>

<mosaic_0001>
module attributes {stable_mosaic.version = 11 : i64} {
  func.func @message_kernel(%arg0: i32, %arg1: memref<128x128xf32, #tpu.memory_space<vmem>>, %arg2: memref<128x128xf32, #tpu.memory_space<vmem>>, %arg3: memref<1x128xf32, #tpu.memory_space<vmem>>, %arg4: memref<128x128xbf16, #tpu.memory_space<vmem>>) attributes {dimension_semantics = [#tpu.dimension_semantics<parallel>], iteration_bounds = array<i64: 1>, scalar_prefetch = 0 : i64, scratch_operands = 0 : i64, tpu.core_type = #tpu.core_type<tc>, window_params = [{transform_indices = @transform_0, window_bounds = array<i64: 128, 128>}, {pipeline_mode = #tpu.pipeline_mode<synchronous>, transform_indices = @transform_1, window_bounds = array<i64: 128, 128>}, {pipeline_mode = #tpu.pipeline_mode<synchronous>, transform_indices = @transform_2, window_bounds = array<i64: 1, 128>}, {transform_indices = @transform_3, window_bounds = array<i64: 128, 128>}]} {
    %c0 = arith.constant 0 : index
    %c0_0 = arith.constant 0 : index
    %0 = vector.load %arg1[%c0, %c0_0] : memref<128x128xf32, #tpu.memory_space<vmem>>, vector<128x128xf32>
    %c0_1 = arith.constant 0 : index
    %c0_2 = arith.constant 0 : index
    %1 = vector.load %arg2[%c0_1, %c0_2] : memref<128x128xf32, #tpu.memory_space<vmem>>, vector<128x128xf32>
    %cst = arith.constant dense<0.000000e+00> : vector<128x128xf32>
    %2 = tpu.matmul %0, %1, %cst {dimension_numbers = #tpu.dot_dimension_numbers<[1], [0], [0], [1], [0, 0, 1, 1], [], []>} : vector<128x128xf32>, vector<128x128xf32>, vector<128x128xf32> -> vector<128x128xf32>
    %c0_3 = arith.constant 0 : index
    %c0_4 = arith.constant 0 : index
    %3 = vector.load %arg3[%c0_3, %c0_4] : memref<1x128xf32, #tpu.memory_space<vmem>>, vector<1x128xf32>
    %4 = vector.broadcast %3 : vector<1x128xf32> to vector<128x128xf32>
    %5 = arith.addf %2, %4 : vector<128x128xf32>
    %cst_5 = arith.constant 0.000000e+00 : f32
    %6 = vector.broadcast %cst_5 : f32 to vector<128x128xf32>
    %7 = arith.maximumf %5, %6 : vector<128x128xf32>
    %8 = arith.truncf %7 : vector<128x128xf32> to vector<128x128xbf16>
    %c0_6 = arith.constant 0 : index
    %c0_7 = arith.constant 0 : index
    %9 = vector.load %arg4[%c0_6, %c0_7] : memref<128x128xbf16, #tpu.memory_space<vmem>>, vector<128x128xbf16>
    tpu.vector_store %arg4[%c0_6, %c0_7], %8 {strides = array<i32>} : memref<128x128xbf16, #tpu.memory_space<vmem>>, vector<128x128xbf16>,
    return
  }
  func.func @transform_0(%arg0: i32) -> (i32, i32) {
    %c0_i32 = arith.constant 0 : i32
    %c0_i32_0 = arith.constant 0 : i32
    return %arg0, %c0_i32 : i32, i32
  }
  func.func @transform_1(%arg0: i32) -> (i32, i32) {
    %c0_i32 = arith.constant 0 : i32
    %c0_i32_0 = arith.constant 0 : i32
    %c0_i32_1 = arith.constant 0 : i32
    return %c0_i32, %c0_i32_0 : i32, i32
  }
  func.func @transform_2(%arg0: i32) -> (i32, i32) {
    %c0_i32 = arith.constant 0 : i32
    %c0_i32_0 = arith.constant 0 : i32
    %c0_i32_1 = arith.constant 0 : i32
    return %c0_i32, %c0_i32_0 : i32, i32
  }
  func.func @transform_3(%arg0: i32) -> (i32, i32) {
    %c0_i32 = arith.constant 0 : i32
    %c0_i32_0 = arith.constant 0 : i32
    return %arg0, %c0_i32 : i32, i32
  }
}

</mosaic_0001>

<bundles_post_ra>
// kernel: tpu_custom_call.1
= control target key start
LH: loop header
LB: loop body
LE: loop exit
PB: predicated region body
PF: predicated region fallthrough
CT: control target
= control target key end

     0   :  { %8 = vsyncpa [#allocation3], 0  ;;  %s702_s0 = inlined_call_operand.hbm [shape: f32[128,128], index: 0, kind: input, shape index: {}]   ;;  %s703_s1 = inlined_call_operand.hbm [shape: f32[128,128], index: 1, kind: input, shape index: {}]   ;;  %s704_s2 = inlined_call_operand.vmem [shape: f32[1,128], index: 2, kind: input, shape index: {}]   ;;  %s705_s3 = inlined_call_operand.hbm [shape: bf16[128,128], index: 3, kind: output, shape index: {}]  }
   0x1   :  { %9 = vsyncpa [#allocation6], 0 }
   0x2   :  { %10 = vsyncpa [#allocation4], 0  ;;  %s636_s12 = smov [#allocation2]   ;;  %s564_s16 = scalar_lea.hbm %s702_s0, 2048 }
   0x3   :  { %s16_s13 = sshll.u32 %s636_s12, 4  ;;  %p565_p0 = scmp.ne.s32.totalorder %s702_s0, %s564_s16  ;;  %s17_s13 = int_to_ptr.vmem [resolvable:$true] %s16_s13 }
   0x4   :  { %p568_p1 = scmp.lt.u32.totalorder %s564_s16, %s702_s0 }
   0x6   :  { %p570_p2 = pnand %p568_p1, %p565_p0 }
   0x8   :  { %573 = shalt.err (!%p570_p2)
}
   0x9   :  { %s574_s21 = scalar_lea.vmem %s17_s13, 2048  ;;  %p579_p4 = scmp.lt.s32.totalorder %s17_s13, %s17_s13 }
   0xa   :  { %p575_p3 = scmp.ne.s32.totalorder %s17_s13, %s574_s21  ;;  %p580_p5 = scmp.lt.s32.totalorder %s574_s21, %s574_s21 }
   0xc   :  { %p581_p6 = por %p580_p5, %p579_p4 }
   0xe   :  { %p582_p7 = pnand %p581_p6, %p575_p3 }
  0x10   :  { %585 = shalt.err (!%p582_p7)
}
  0x11   :  { %s637_s22 = smov 128   ;;  %s638_s23 = smov 8  }
  0x12   :  { %22 = dma.hbm_to_vmem [thread:$0]  %s702_s0, 2048, %s17_s13, [#allocation3], %s637_s22, %s637_s22, %s638_s23  }
  0x13   :  { %s639_s26 = smov [#allocation5]   ;;  %s586_s30 = scalar_lea.hbm %s703_s1, 2048 }
  0x14   :  { %s28_s27 = sshll.u32 %s639_s26, 4  ;;  %p587_p8 = scmp.ne.s32.totalorder %s703_s1, %s586_s30  ;;  %s29_s27 = int_to_ptr.vmem [resolvable:$true] %s28_s27 }
  0x15   :  { %p590_p9 = scmp.lt.u32.totalorder %s586_s30, %s703_s1 }
  0x17   :  { %p592_p10 = pnand %p590_p9, %p587_p8 }
  0x19   :  { %595 = shalt.err (!%p592_p10)
}
  0x1a   :  { %s596_s8 = scalar_lea.vmem %s29_s27, 2048  ;;  %p601_p12 = scmp.lt.s32.totalorder %s29_s27, %s29_s27 }
  0x1b   :  { %p597_p11 = scmp.ne.s32.totalorder %s29_s27, %s596_s8  ;;  %p602_p13 = scmp.lt.s32.totalorder %s596_s8, %s596_s8 }
  0x1d   :  { %p603_p0 = por %p602_p13, %p601_p12 }
  0x1f   :  { %p604_p1 = pnand %p603_p0, %p597_p11 }
  0x21   :  { %607 = shalt.err (!%p604_p1)
}
  0x22   :  { %34 = dma.hbm_to_vmem [thread:$0]  %s703_s1, 2048, %s29_s27, [#allocation6], %s637_s22, %s637_s22, %s638_s23  }
  0x23   :  { %630 = dma.done.wait [#allocation3], 2048  }
  0x24   :  { %631 = vsyncadd [#allocation3], 4294965248 }
  0x25   :  { %632 = dma.done.wait [#allocation6], 2048  }
  0x26   :  { %633 = vsyncadd [#allocation6], 4294965248  ;;  %v59_v0 = vld [vmem:[#allocation5] sm:$0xff]  ;;  %v60_v1 = vld [vmem:[#allocation5 + $0x8] sm:$0xff] }
  0x27   :  { %v61_v2 = vld [vmem:[#allocation5 + $0x10] sm:$0xff]  ;;  %v509_v3 = vpack.c.bf16 %v60_v1, %v59_v0  ;;  %v62_v4 = vld [vmem:[#allocation5 + $0x18] sm:$0xff]  ;;  %v63_v6 = vld [vmem:[#allocation5 + $0x20] sm:$0xff] }
  0x28   :  { %v513_v5 = vpack.c.bf16 %v62_v4, %v61_v2  ;;  %v64_v7 = vld [vmem:[#allocation5 + $0x28] sm:$0xff]  ;;  %v43_v9 = vld [vmem:[#allocation2] sm:$0xff]  ;;  %v65_v11 = vld [vmem:[#allocation5 + $0x30] sm:$0xff] }
  0x29   :  { %510 = vmatprep.subr.bf16.mxu0 %v509_v3  ;;  %541 = vmatprep.subr.bf16.mxu1 %v509_v3  ;;  %v517_v8 = vpack.c.bf16 %v64_v7, %v63_v6  ;;  %v51_v10 = vld [vmem:[#allocation2 + $0x40] sm:$0xff]  ;;  %v66_v12 = vld [vmem:[#allocation5 + $0x38] sm:$0xff]  ;;  %v68_v15 = vld [vmem:[#allocation5 + $0x48] sm:$0xff] }
  0x2a   :  { %512 = vmatpush3.bf16.msra.mxu0 %v509_v3  ;;  %549 = vmatpush3.bf16.msra.mxu1 %v509_v3  ;;  %v521_v13 = vpack.c.bf16 %v66_v12, %v65_v11  ;;  %v67_v14 = vld [vmem:[#allocation5 + $0x40] sm:$0xff]  ;;  %v69_v17 = vld [vmem:[#allocation5 + $0x50] sm:$0xff]  ;;  %v70_v18 = vld [vmem:[#allocation5 + $0x58] sm:$0xff] }
  0x2b   :  { %514 = vmatprep.subr.bf16.mxu0 %v513_v5  ;;  %542 = vmatprep.subr.bf16.mxu1 %v513_v5  ;;  %v525_v16 = vpack.c.bf16 %v68_v15, %v67_v14  ;;  %v529_v19 = vpack.c.bf16 %v70_v18, %v69_v17  ;;  %v71_v20 = vld [vmem:[#allocation5 + $0x60] sm:$0xff]  ;;  %v72_v21 = vld [vmem:[#allocation5 + $0x68] sm:$0xff]  ;;  %v73_v23 = vld [vmem:[#allocation5 + $0x70] sm:$0xff] }
  0x2c   :  { %485 = vmatprep.mubr.f32.mxu0 %v43_v9  ;;  %497 = vmatprep.mubr.f32.mxu1 %v51_v10  ;;  %v533_v22 = vpack.c.bf16 %v72_v21, %v71_v20  ;;  %v74_v24 = vld [vmem:[#allocation5 + $0x78] sm:$0xff]  ;;  %v44_v26 = vld [vmem:[#allocation2 + $0x8] sm:$0xff]  ;;  %v45_v28 = vld [vmem:[#allocation2 + $0x10] sm:$0xff] }
  0x2d   :  { %v537_v25 = vpack.c.bf16 %v74_v24, %v73_v23  ;;  %v52_v27 = vld [vmem:[#allocation2 + $0x48] sm:$0xff]  ;;  %v53_v29 = vld [vmem:[#allocation2 + $0x50] sm:$0xff]  ;;  %v46_v30 = vld [vmem:[#allocation2 + $0x18] sm:$0xff] }
  0x2e   :  { %516 = vmatpush3.bf16.msra.mxu0 %v513_v5  ;;  %550 = vmatpush3.bf16.msra.mxu1 %v513_v5  ;;  %v54_v31 = vld [vmem:[#allocation2 + $0x58] sm:$0xff]  ;;  %v47_v32 = vld [vmem:[#allocation2 + $0x20] sm:$0xff]  ;;  %v48_v34 = vld [vmem:[#allocation2 + $0x28] sm:$0xff] }
  0x2f   :  { %518 = vmatprep.subr.bf16.mxu0 %v517_v8  ;;  %543 = vmatprep.subr.bf16.mxu1 %v517_v8  ;;  %v55_v33 = vld [vmem:[#allocation2 + $0x60] sm:$0xff]  ;;  %v56_v35 = vld [vmem:[#allocation2 + $0x68] sm:$0xff]  ;;  %v49_v36 = vld [vmem:[#allocation2 + $0x30] sm:$0xff] }
  0x30   :  { %v57_v37 = vld [vmem:[#allocation2 + $0x70] sm:$0xff]  ;;  %v50_v38 = vld [vmem:[#allocation2 + $0x38] sm:$0xff]  ;;  %v341_v40 = vld [vmem:[%s704_s2] ss:$0 sm:$0xff]  ;;  %s640_s2 = smov [#allocation7]  }
  0x31   :  { %v58_v39 = vld [vmem:[#allocation2 + $0x78] sm:$0xff]  ;;  %s328_s11 = sshll.u32 %s640_s2, 4  ;;  %s329_s11 = int_to_ptr.vmem [resolvable:$true] %s328_s11 }
  0x32   :  { %520 = vmatpush3.bf16.msra.mxu0 %v517_v8  ;;  %551 = vmatpush3.bf16.msra.mxu1 %v517_v8  ;;  %s608_s12 = scalar_lea.vmem %s329_s11, 1024  ;;  %p613_p3 = scmp.lt.s32.totalorder %s329_s11, %s329_s11 }
  0x33   :  { %522 = vmatprep.subr.bf16.mxu0 %v521_v13  ;;  %544 = vmatprep.subr.bf16.mxu1 %v521_v13  ;;  %p609_p2 = scmp.ne.s32.totalorder %s329_s11, %s608_s12  ;;  %p614_p4 = scmp.lt.s32.totalorder %s608_s12, %s608_s12 }
  0x35   :  { %p615_p5 = por %p614_p4, %p613_p3 }
  0x36   :  { %524 = vmatpush3.bf16.msra.mxu0 %v521_v13  ;;  %552 = vmatpush3.bf16.msra.mxu1 %v521_v13 }
  0x37   :  { %526 = vmatprep.subr.bf16.mxu0 %v525_v16  ;;  %545 = vmatprep.subr.bf16.mxu1 %v525_v16  ;;  %p616_p6 = pnand %p615_p5, %p609_p2 }
  0x3a   :  { %528 = vmatpush3.bf16.msra.mxu0 %v525_v16  ;;  %553 = vmatpush3.bf16.msra.mxu1 %v525_v16 }
  0x3b   :  { %530 = vmatprep.subr.bf16.mxu0 %v529_v19  ;;  %546 = vmatprep.subr.bf16.mxu1 %v529_v19 }
  0x3e   :  { %532 = vmatpush3.bf16.msra.mxu0 %v529_v19  ;;  %554 = vmatpush3.bf16.msra.mxu1 %v529_v19 }
  0x3f   :  { %534 = vmatprep.subr.bf16.mxu0 %v533_v22  ;;  %547 = vmatprep.subr.bf16.mxu1 %v533_v22 }
  0x42   :  { %536 = vmatpush3.bf16.msra.mxu0 %v533_v22  ;;  %555 = vmatpush3.bf16.msra.mxu1 %v533_v22 }
  0x43   :  { %538 = vmatprep.subr.bf16.mxu0 %v537_v25  ;;  %548 = vmatprep.subr.bf16.mxu1 %v537_v25 }
  0x46   :  { %540 = vmatpush3.bf16.msra.mxu0 %v537_v25  ;;  %556 = vmatpush3.bf16.msra.mxu1 %v537_v25 }
  0x49   :  { %486 = vmatmul.mubr.f32.vlgmr.msra.gmra.mrb[0].mxu0 %v44_v26  ;;  %498 = vmatmul.mubr.f32.vlgmr.msra.gmra.mrb[0].mxu1 %v52_v27 }
  0x4a   :  { %488 = vmatprep.mubr.f32.mxu0 %v45_v28  ;;  %500 = vmatprep.mubr.f32.mxu1 %v53_v29 }
  0x4d   :  { %489 = vmatmul.mubr.f32.gmra.mrb[2].mxu0 %v46_v30  ;;  %501 = vmatmul.mubr.f32.gmra.mrb[2].mxu1 %v54_v31 }
  0x4e   :  { %491 = vmatprep.mubr.f32.mxu0 %v47_v32  ;;  %503 = vmatprep.mubr.f32.mxu1 %v55_v33 }
  0x51   :  { %492 = vmatmul.mubr.f32.gmra.mrb[4].mxu0 %v48_v34  ;;  %504 = vmatmul.mubr.f32.gmra.mrb[4].mxu1 %v56_v35 }
  0x52   :  { %494 = vmatprep.mubr.f32.mxu0 %v49_v36  ;;  %506 = vmatprep.mubr.f32.mxu1 %v57_v37 }
  0x55   :  { %495 = vmatmul.mubr.f32.gmra.mrb[6].mxu0 %v50_v38  ;;  %507 = vmatmul.mubr.f32.gmra.mrb[6].mxu1 %v58_v39 }
 0x11c   :  { %v487_v41 = vpop.f32.mrb[0].mxu0  ;;  %v499_v42 = vpop.f32.mrb[0].mxu1 }
 0x11d   :  { %v154_v43 = vadd.f32 %v487_v41, %v341_v40  ;;  %v194_v44 = vadd.f32 %v499_v42, %v341_v40  ;;  %v148_v45 = vpop.f32.mrb[1].mxu0  ;;  %v188_v46 = vpop.f32.mrb[1].mxu1 }
 0x11e   :  { %v149_v47 = vadd.f32 %v341_v40, %v148_v45  ;;  %v189_v48 = vadd.f32 %v341_v40, %v188_v46 }
 0x11f   :  { %v228_v49 = vmax.f32 %v154_v43, 0.0  ;;  %v236_v50 = vmax.f32 %v194_v44, 0.0 }
 0x120   :  { %v227_v51 = vmax.f32 %v149_v47, 0.0  ;;  %v235_v52 = vmax.f32 %v189_v48, 0.0  ;;  %v490_v53 = vpop.f32.mrb[2].mxu0  ;;  %v502_v54 = vpop.f32.mrb[2].mxu1 }
 0x121   :  { %v164_v55 = vadd.f32 %v490_v53, %v341_v40  ;;  %v204_v56 = vadd.f32 %v502_v54, %v341_v40  ;;  %v158_v57 = vpop.f32.mrb[3].mxu0  ;;  %v198_v58 = vpop.f32.mrb[3].mxu1 }
 0x122   :  { %v377_v59 = vpack.c.bf16 %v228_v49, %v227_v51  ;;  %v397_v60 = vpack.c.bf16 %v236_v50, %v235_v52  ;;  %v159_v61 = vadd.f32 %v341_v40, %v158_v57  ;;  %v199_v62 = vadd.f32 %v341_v40, %v198_v58 }
 0x123   :  { %v230_v63 = vmax.f32 %v164_v55, 0.0  ;;  %v238_v0 = vmax.f32 %v204_v56, 0.0 }
 0x124   :  { %378 = vst [vmem:[#allocation7] sm:$0xff] %v377_v59   ;;  %417 = vst [vmem:[#allocation7 + $0x20] sm:$0xff] %v397_v60   ;;  %v229_v1 = vmax.f32 %v159_v61, 0.0  ;;  %v237_v2 = vmax.f32 %v199_v62, 0.0  ;;  %v493_v3 = vpop.f32.mrb[4].mxu0  ;;  %v505_v4 = vpop.f32.mrb[4].mxu1 }
 0x125   :  { %v174_v5 = vadd.f32 %v493_v3, %v341_v40  ;;  %v214_v6 = vadd.f32 %v505_v4, %v341_v40  ;;  %v168_v7 = vpop.f32.mrb[5].mxu0  ;;  %v208_v8 = vpop.f32.mrb[5].mxu1 }
 0x126   :  { %v382_v9 = vpack.c.bf16 %v230_v63, %v229_v1  ;;  %v402_v10 = vpack.c.bf16 %v238_v0, %v237_v2  ;;  %v169_v11 = vadd.f32 %v341_v40, %v168_v7  ;;  %v209_v12 = vadd.f32 %v341_v40, %v208_v8 }
 0x127   :  { %v232_v13 = vmax.f32 %v174_v5, 0.0  ;;  %v240_v14 = vmax.f32 %v214_v6, 0.0 }
 0x128   :  { %414 = vst [vmem:[#allocation7 + $0x8] sm:$0xff] %v382_v9   ;;  %418 = vst [vmem:[#allocation7 + $0x28] sm:$0xff] %v402_v10   ;;  %v231_v15 = vmax.f32 %v169_v11, 0.0  ;;  %v239_v16 = vmax.f32 %v209_v12, 0.0  ;;  %v496_v17 = vpop.f32.mrb[6].mxu0  ;;  %v508_v18 = vpop.f32.mrb[6].mxu1 }
 0x129   :  { %v184_v19 = vadd.f32 %v496_v17, %v341_v40  ;;  %v224_v20 = vadd.f32 %v508_v18, %v341_v40  ;;  %v178_v21 = vpop.f32.mrb[7].mxu0  ;;  %v218_v22 = vpop.f32.mrb[7].mxu1 }
 0x12a   :  { %v387_v23 = vpack.c.bf16 %v232_v13, %v231_v15  ;;  %v407_v24 = vpack.c.bf16 %v240_v14, %v239_v16  ;;  %v179_v25 = vadd.f32 %v341_v40, %v178_v21  ;;  %v219_v26 = vadd.f32 %v341_v40, %v218_v22 }
 0x12b   :  { %v234_v27 = vmax.f32 %v184_v19, 0.0  ;;  %v242_v28 = vmax.f32 %v224_v20, 0.0 }
 0x12c   :  { %415 = vst [vmem:[#allocation7 + $0x10] sm:$0xff] %v387_v23   ;;  %419 = vst [vmem:[#allocation7 + $0x30] sm:$0xff] %v407_v24   ;;  %v233_v29 = vmax.f32 %v179_v25, 0.0  ;;  %v241_v30 = vmax.f32 %v219_v26, 0.0 }
 0x12e   :  { %v392_v31 = vpack.c.bf16 %v234_v27, %v233_v29  ;;  %v412_v32 = vpack.c.bf16 %v242_v28, %v241_v30 }
 0x130   :  { %416 = vst [vmem:[#allocation7 + $0x18] sm:$0xff] %v392_v31   ;;  %420 = vst [vmem:[#allocation7 + $0x38] sm:$0xff] %v412_v32  }
 0x131   :  { %619 = shalt.err (!%p616_p6)
}
 0x132   :  { %s620_s15 = scalar_lea.hbm %s705_s3, 1024 }
 0x133   :  { %p621_p7 = scmp.ne.s32.totalorder %s705_s3, %s620_s15  ;;  %p624_p8 = scmp.lt.u32.totalorder %s620_s15, %s705_s3 }
 0x135   :  { %p626_p9 = pnand %p624_p8, %p621_p7 }
 0x137   :  { %629 = shalt.err (!%p626_p9)
}
 0x138   :  { %s641_s20 = smov 64   ;;  %s642_s21 = smov 4  }
 0x139   :  { %334 = dma.vmem_to_hbm [thread:$0]  %s329_s11, 1024, %s705_s3, [#allocation4], %s641_s20, %s641_s20, %s642_s21  }
 0x13a   :  { %634 = dma.done.wait [#allocation4], 1024  }
 0x13b   :  { %635 = vsyncadd [#allocation4], 4294966272 }
 0x13c   :  { %338 = vsyncpa [#allocation3], 1 }
 0x13d   :  { %339 = vsyncpa [#allocation6], 1 }
 0x13e   :  { %340 = vsyncpa [#allocation4], 1 }

</bundles_post_ra>
